<compile_context>
chip_gen: v7x
topology: tpu7x:2x2x1
jax: 0.10.0
libtpu: 0.0.40
codegen_flags: <defaults>
</compile_context>

<pallas_src>
import functools

import jax
import jax.numpy as jnp
from jax.experimental import pallas as pl
from jax.experimental.pallas import tpu as pltpu

_EPS = 1e-6  # matches torch.nn.functional.pairwise_distance default eps


def _round_up(x, m):
    return ((x + m - 1) // m) * m


def _contrastive_loss_kernel(x1_ref, x2_ref, label_ref, out_ref, *,
                             margin, batch, block_rows, steps, need_mask):
    p = pl.program_id(0)   # partial-sum index ("parallel" -> one per TensorCore on v7x)
    s = pl.program_id(1)   # batch-tile index within this partial ("arbitrary")

    # Output block (1, 8, 128) is resident across the inner reduction axis; init once.
    @pl.when(s == 0)
    def _():
        out_ref[...] = jnp.zeros_like(out_ref)

    x1 = x1_ref[...].astype(jnp.float32)       # (TB, D) upcast in-kernel (bf16 input OK)
    x2 = x2_ref[...].astype(jnp.float32)
    lab = label_ref[...].astype(jnp.float32)   # (TB, 1)

    diff = x1 - x2 + _EPS                                     # (TB, D)  VPU
    sq_dist = jnp.sum(diff * diff, axis=-1, keepdims=True)    # (TB, 1)  XLU lane reduce
    dist = jnp.sqrt(sq_dist)                                  # one sqrt per row (EUP)
    hinge = jnp.maximum(margin - dist, 0.0)
    per_example = (1.0 - lab) * sq_dist + lab * hinge * hinge  # (TB, 1)

    if need_mask:
        # Zero out rows that were added only to pad B up to a tile multiple.
        row0 = (p * steps + s) * block_rows
        rows = row0 + jax.lax.broadcasted_iota(jnp.int32, per_example.shape, 0)
        per_example = jnp.where(rows < batch, per_example, 0.0)

    # Accumulate a RAW (un-normalized) partial sum; normalization happens once in the
    # wrapper.  Broadcasting the scalar into the lane-dense tile is free under the
    # memory bound.
    out_ref[...] += jnp.sum(per_example)


def contrastive_loss(output1, output2, label, margin=0.5, *,
                     block_rows=1024, num_partials=None):
    """output1, output2: (B, D) float arrays (f32 or bf16); label: (B,) float 0/1."""
    B, D = output1.shape
    itemsize = jnp.dtype(output1.dtype).itemsize

    # Batch tile: as large as the double-buffered input budget allows.
    # 2 inputs x 2 pipeline buffers x TB x D x itemsize <= ~24 MiB  (fits v5e/v6e/v7x).
    vmem_budget = 24 * 1024 * 1024
    max_tb = max(16, vmem_budget // (4 * D * itemsize))
    tb = max(16, min(block_rows, max_tb))

    if num_partials is None:
        # One partial per v7x TensorCore, but only when there is enough work;
        # tiny problems stay effectively single-block (grid (1, 1)).
        num_partials = 2 if B >= 2 * tb else 1
    num_partials = max(1, min(num_partials, -(-B // 16)))

    rows_per_partial = -(-B // num_partials)
    tb = min(tb, _round_up(rows_per_partial, 16))
    tb = _round_up(tb, 16)                      # sublane-friendly for f32 and bf16
    steps = -(-rows_per_partial // tb)
    padded_B = num_partials * steps * tb

    label2d = label.reshape(B, 1).astype(jnp.float32)

    x1, x2, lab = output1, output2, label2d
    pad = padded_B - B
    if pad:
        x1 = jnp.pad(x1, ((0, pad), (0, 0)))
        x2 = jnp.pad(x2, ((0, pad), (0, 0)))
        lab = jnp.pad(lab, ((0, pad), (0, 0)))

    kernel = functools.partial(
        _contrastive_loss_kernel,
        margin=float(margin), batch=B, block_rows=tb, steps=steps,
        need_mask=(padded_B != B))

    partials = pl.pallas_call(
        kernel,
        out_shape=jax.ShapeDtypeStruct((num_partials, 8, 128), jnp.float32),
        grid_spec=pltpu.PrefetchScalarGridSpec(
            num_scalar_prefetch=0,
            grid=(num_partials, steps),
            in_specs=[
                pl.BlockSpec((tb, D), lambda p, s: (p * steps + s, 0)),  # output1 tile
                pl.BlockSpec((tb, D), lambda p, s: (p * steps + s, 0)),  # output2 tile
                pl.BlockSpec((tb, 1), lambda p, s: (p * steps + s, 0)),  # label tile
            ],
            out_specs=pl.BlockSpec((1, 8, 128), lambda p, s: (p, 0, 0)),
        ),
        compiler_params=pltpu.CompilerParams(
            dimension_semantics=("parallel", "arbitrary"),
            vmem_limit_bytes=48 * 1024 * 1024,
        ),
    )(x1, x2, lab)

    # Finalize: sum per-core partial sums and divide by B exactly once.
    return jnp.sum(partials[:, 0, 0]) / B


def _reference_loss(output1, output2, label, margin=0.5):
    # Pure-JAX reference mirroring the PyTorch forward (f32 math, like the kernel).
    o1 = output1.astype(jnp.float32)
    o2 = output2.astype(jnp.float32)
    d = jnp.sqrt(jnp.sum((o1 - o2 + _EPS) ** 2, axis=-1))
    return jnp.mean((1.0 - label) * d ** 2
                    + label * jnp.maximum(margin - d, 0.0) ** 2)


if __name__ == "__main__":
    key = jax.random.PRNGKey(0)
    k1, k2, k3, k4, k5, k6 = jax.random.split(key, 6)

    # --- Small f32 case (single-block path, B not a tile multiple -> masking) ---
    B, D = 8, 32
    o1 = jax.random.normal(k1, (B, D), dtype=jnp.float32)
    o2 = jax.random.normal(k2, (B, D), dtype=jnp.float32)
    lab = jax.random.bernoulli(k3, p=0.5, shape=(B,)).astype(jnp.float32)

    loss = jax.block_until_ready(contrastive_loss(o1, o2, lab, margin=0.5))
    ref = _reference_loss(o1, o2, lab, margin=0.5)
    assert jnp.allclose(loss, ref, rtol=1e-5, atol=1e-6), (loss, ref)

    # --- bf16 case exercising the tiled / pipelined / per-core-partial path ---
    B2, D2 = 2048, 128
    o1b = jax.random.normal(k4, (B2, D2), dtype=jnp.float32).astype(jnp.bfloat16)
    o2b = jax.random.normal(k5, (B2, D2), dtype=jnp.float32).astype(jnp.bfloat16)
    labb = jax.random.bernoulli(k6, p=0.5, shape=(B2,)).astype(jnp.float32)

    loss2 = jax.block_until_ready(
        contrastive_loss(o1b, o2b, labb, margin=0.5, block_rows=512, num_partials=2))
    ref2 = _reference_loss(o1b, o2b, labb, margin=0.5)
    assert jnp.allclose(loss2, ref2, rtol=1e-4, atol=1e-4), (loss2, ref2)

    print("KERNEL_OK")
</pallas_src>

<mosaic_0001>
module attributes {stable_mosaic.version = 11 : i64} {
  func.func @_contrastive_loss_kernel(%arg0: i32, %arg1: i32, %arg2: memref<16x32xf32, #tpu.memory_space<vmem>>, %arg3: memref<16x32xf32, #tpu.memory_space<vmem>>, %arg4: memref<16x1xf32, #tpu.memory_space<vmem>>, %arg5: memref<1x8x128xf32, #tpu.memory_space<vmem>>) attributes {dimension_semantics = [#tpu.dimension_semantics<parallel>, #tpu.dimension_semantics<arbitrary>], iteration_bounds = array<i64: 1, 1>, scalar_prefetch = 0 : i64, scratch_operands = 0 : i64, tpu.core_type = #tpu.core_type<tc>, window_params = [{transform_indices = @transform_0, window_bounds = array<i64: 16, 32>}, {transform_indices = @transform_1, window_bounds = array<i64: 16, 32>}, {transform_indices = @transform_2, window_bounds = array<i64: 16, 1>}, {transform_indices = @transform_3, window_bounds = array<i64: 1, 8, 128>}]} {
    %c0_i32 = arith.constant 0 : i32
    %0 = arith.cmpi eq, %arg1, %c0_i32 : i32
    %1 = arith.extui %0 : i1 to i32
    %c0_i32_0 = arith.constant 0 : i32
    %2 = arith.cmpi ne, %1, %c0_i32_0 : i32
    scf.if %2 {
      %cst_18 = arith.constant 0.000000e+00 : f32
      %41 = vector.broadcast %cst_18 : f32 to vector<1x8x128xf32>
      %c0_19 = arith.constant 0 : index
      %c0_20 = arith.constant 0 : index
      %c0_21 = arith.constant 0 : index
      %42 = vector.load %arg5[%c0_19, %c0_20, %c0_21] : memref<1x8x128xf32, #tpu.memory_space<vmem>>, vector<1x8x128xf32>
      tpu.vector_store %arg5[%c0_19, %c0_20, %c0_21], %41 {strides = array<i32>} : memref<1x8x128xf32, #tpu.memory_space<vmem>>, vector<1x8x128xf32>,
    } else {
    }
    %c0 = arith.constant 0 : index
    %c0_1 = arith.constant 0 : index
    %3 = vector.load %arg2[%c0, %c0_1] : memref<16x32xf32, #tpu.memory_space<vmem>>, vector<16x32xf32>
    %c0_2 = arith.constant 0 : index
    %c0_3 = arith.constant 0 : index
    %4 = vector.load %arg3[%c0_2, %c0_3] : memref<16x32xf32, #tpu.memory_space<vmem>>, vector<16x32xf32>
    %c0_4 = arith.constant 0 : index
    %c0_5 = arith.constant 0 : index
    %5 = vector.load %arg4[%c0_4, %c0_5] : memref<16x1xf32, #tpu.memory_space<vmem>>, vector<16x1xf32>
    %6 = arith.subf %3, %4 : vector<16x32xf32>
    %cst = arith.constant 9.99999997E-7 : f32
    %7 = vector.broadcast %cst : f32 to vector<16x32xf32>
    %8 = arith.addf %6, %7 : vector<16x32xf32>
    %9 = arith.mulf %8, %8 : vector<16x32xf32>
    %cst_6 = arith.constant dense<0.000000e+00> : vector<16xf32>
    %10 = vector.multi_reduction <add>, %9, %cst_6 [1] : vector<16x32xf32> to vector<16xf32>
    %11 = vector.shape_cast %10 : vector<16xf32> to vector<16x1xf32>
    %12 = math.sqrt %11 : vector<16x1xf32>
    %cst_7 = arith.constant 5.000000e-01 : f32
    %13 = vector.broadcast %cst_7 : f32 to vector<16x1xf32>
    %14 = arith.subf %13, %12 : vector<16x1xf32>
    %cst_8 = arith.constant 0.000000e+00 : f32
    %15 = vector.broadcast %cst_8 : f32 to vector<16x1xf32>
    %16 = arith.maximumf %14, %15 : vector<16x1xf32>
    %cst_9 = arith.constant 1.000000e+00 : f32
    %17 = vector.broadcast %cst_9 : f32 to vector<16x1xf32>
    %18 = arith.subf %17, %5 : vector<16x1xf32>
    %19 = arith.mulf %18, %11 : vector<16x1xf32>
    %20 = arith.mulf %5, %16 : vector<16x1xf32>
    %21 = arith.mulf %20, %16 : vector<16x1xf32>
    %22 = arith.addf %19, %21 : vector<16x1xf32>
    %c1_i32 = arith.constant 1 : i32
    %23 = arith.muli %arg0, %c1_i32 : i32
    %24 = arith.addi %23, %arg1 : i32
    %c16_i32 = arith.constant 16 : i32
    %25 = arith.muli %24, %c16_i32 : i32
    %26 = tpu.iota {dimensions = array<i32: 0>} : vector<16x1xi32>
    %27 = vector.broadcast %25 : i32 to vector<16x1xi32>
    %28 = arith.addi %27, %26 : vector<16x1xi32>
    %c8_i32 = arith.constant 8 : i32
    %29 = vector.broadcast %c8_i32 : i32 to vector<16x1xi32>
    %30 = arith.cmpi slt, %28, %29 : vector<16x1xi32>
    %cst_10 = arith.constant 0.000000e+00 : f32
    %31 = vector.broadcast %cst_10 : f32 to vector<16x1xf32>
    %32 = arith.select %30, %22, %31 : vector<16x1xi1>, vector<16x1xf32>
    %c0_11 = arith.constant 0 : index
    %c0_12 = arith.constant 0 : index
    %c0_13 = arith.constant 0 : index
    %33 = vector.load %arg5[%c0_11, %c0_12, %c0_13] : memref<1x8x128xf32, #tpu.memory_space<vmem>>, vector<1x8x128xf32>
    %34 = vector.shape_cast %32 : vector<16x1xf32> to vector<1x16x1xf32>
    %cst_14 = arith.constant dense<0.000000e+00> : vector<1xf32>
    %35 = vector.multi_reduction <add>, %34, %cst_14 [1, 2] : vector<1x16x1xf32> to vector<1xf32>
    %36 = vector.shape_cast %35 : vector<1xf32> to vector<1x1x1xf32>
    %37 = vector.extract %36[0, 0, 0] : f32 from vector<1x1x1xf32>
    %38 = vector.broadcast %37 : f32 to vector<1x8x128xf32>
    %39 = arith.addf %33, %38 : vector<1x8x128xf32>
    %c0_15 = arith.constant 0 : index
    %c0_16 = arith.constant 0 : index
    %c0_17 = arith.constant 0 : index
    %40 = vector.load %arg5[%c0_15, %c0_16, %c0_17] : memref<1x8x128xf32, #tpu.memory_space<vmem>>, vector<1x8x128xf32>
    tpu.vector_store %arg5[%c0_15, %c0_16, %c0_17], %39 {strides = array<i32>} : memref<1x8x128xf32, #tpu.memory_space<vmem>>, vector<1x8x128xf32>,
    return
  }
  func.func @transform_0(%arg0: i32, %arg1: i32) -> (i32, i32) {
    %c1_i32 = arith.constant 1 : i32
    %0 = arith.muli %arg0, %c1_i32 : i32
    %1 = arith.addi %0, %arg1 : i32
    %c0_i32 = arith.constant 0 : i32
    %c0_i32_0 = arith.constant 0 : i32
    return %1, %c0_i32 : i32, i32
  }
  func.func @transform_1(%arg0: i32, %arg1: i32) -> (i32, i32) {
    %c1_i32 = arith.constant 1 : i32
    %0 = arith.muli %arg0, %c1_i32 : i32
    %1 = arith.addi %0, %arg1 : i32
    %c0_i32 = arith.constant 0 : i32
    %c0_i32_0 = arith.constant 0 : i32
    return %1, %c0_i32 : i32, i32
  }
  func.func @transform_2(%arg0: i32, %arg1: i32) -> (i32, i32) {
    %c1_i32 = arith.constant 1 : i32
    %0 = arith.muli %arg0, %c1_i32 : i32
    %1 = arith.addi %0, %arg1 : i32
    %c0_i32 = arith.constant 0 : i32
    %c0_i32_0 = arith.constant 0 : i32
    return %1, %c0_i32 : i32, i32
  }
  func.func @transform_3(%arg0: i32, %arg1: i32) -> (i32, i32, i32) {
    %c0_i32 = arith.constant 0 : i32
    %c0_i32_0 = arith.constant 0 : i32
    %c0_i32_1 = arith.constant 0 : i32
    return %arg0, %c0_i32, %c0_i32_0 : i32, i32, i32
  }
}

</mosaic_0001>

<bundles_post_ra>
// kernel: tpu_custom_call.1
= control target key start
LH: loop header
LB: loop body
LE: loop exit
PB: predicated region body
PF: predicated region fallthrough
CT: control target
= control target key end

     0   :  { %8 = vsyncpa [#allocation3], 0  ;;  %s298_s0 = inlined_call_operand.vmem [shape: f32[16,32], index: 0, kind: input, shape index: {}]   ;;  %s299_s1 = inlined_call_operand.hbm [shape: f32[16,32], index: 1, kind: input, shape index: {}]   ;;  %s300_s2 = inlined_call_operand.vmem [shape: f32[16,1], index: 2, kind: input, shape index: {}]   ;;  %s301_s3 = inlined_call_operand.hbm [shape: f32[1,8,128], index: 3, kind: output, shape index: {}]  }
   0x1   :  { %9 = vsyncpa [#allocation4], 0  ;;  %s244_s12 = smov [#allocation2]   ;;  %s196_s16 = scalar_lea.hbm %s299_s1, 256 }
   0x2   :  { %s29_s13 = sshll.u32 %s244_s12, 4  ;;  %p197_p0 = scmp.ne.s32.totalorder %s299_s1, %s196_s16  ;;  %s30_s13 = int_to_ptr.vmem [resolvable:$true] %s29_s13 }
   0x3   :  { %p200_p1 = scmp.lt.u32.totalorder %s196_s16, %s299_s1 }
   0x5   :  { %p202_p2 = pnand %p200_p1, %p197_p0 }
   0x7   :  { %205 = shalt.err (!%p202_p2)
}
   0x8   :  { %s206_s21 = scalar_lea.vmem %s30_s13, 256  ;;  %p211_p4 = scmp.lt.s32.totalorder %s30_s13, %s30_s13 }
   0x9   :  { %p207_p3 = scmp.ne.s32.totalorder %s30_s13, %s206_s21  ;;  %p212_p5 = scmp.lt.s32.totalorder %s206_s21, %s206_s21 }
   0xb   :  { %p213_p6 = por %p212_p5, %p211_p4 }
   0xd   :  { %p214_p7 = pnand %p213_p6, %p207_p3 }
   0xf   :  { %217 = shalt.err (!%p214_p7)
}
  0x10   :  { %s245_s22 = smov 128   ;;  %s246_s23 = smov 8  }
  0x11   :  { %35 = dma.hbm_to_vmem [thread:$0]  %s299_s1, 256, %s30_s13, [#allocation3], %s245_s22, %s245_s22, %s246_s23  }
  0x12   :  { %240 = dma.done.wait [#allocation3], 256  }
  0x13   :  { %241 = vsyncadd [#allocation3], 4294967040  ;;  %v84_v0 = vld [vmem:[%s298_s0] sm:$0xff]  ;;  %vm96_vm0 = vcmask 261120   ;;  %vm144_vm3 = vcmask 7168   ;;  %s247_s0 = smov [#allocation5]  }
  0x14   :  { %v86_v1 = vld [vmem:[#allocation2] sm:$0xff] }
  0x15   :  { %v90_v2 = vsub.f32 %v84_v0, %v86_v1  ;;  %v88_v11 = vld [vmem:[%s300_s2] sm:$0xff]  ;;  %s166_s2 = sshll.u32 %s247_s0, 4  ;;  %s167_s2 = int_to_ptr.vmem [resolvable:$true] %s166_s2 }
  0x16   :  { %v121_v15 = vsub.f32 1.0, %v88_v11  ;;  %s218_s30 = scalar_lea.vmem %s167_s2, 128  ;;  %p223_p9 = scmp.lt.s32.totalorder %s167_s2, %s167_s2 }
  0x17   :  { %v92_v3 = vadd.f32 1e-06, %v90_v2  ;;  %p219_p8 = scmp.ne.s32.totalorder %s167_s2, %s218_s30  ;;  %p224_p10 = scmp.lt.s32.totalorder %s218_s30, %s218_s30 }
  0x19   :  { %v94_v4 = vmul.f32 %v92_v3, %v92_v3  ;;  %p225_p11 = por %p224_p10, %p223_p9 }
  0x1b   :  { %v97_v5 = vsel %vm96_vm0, %v94_v4, 0.0  ;;  %p226_p12 = pnand %p225_p11, %p219_p8 }
  0x1c   :  { %98 = vadd.xlane.f32.xlu0 %v97_v5 }
  0xa9   :  { %v99_v6 = vpop.xlane.xlu0 %98 }
  0xaa   :  { %194 = vrsqrt.f32 %v99_v6  ;;  %vm105_vm1 = vcmp.eq.f32.partialorder %v99_v6, inf  ;;  %v108_v9 = vand.u32 2147483648, %v99_v6  ;;  %vm107_vm2 = vcmp.eq.f32.partialorder %v99_v6, 0.0 }
  0xab   :  { %v123_v17 = vmul.f32 %v121_v15, %v99_v6 }
  0xb4   :  { %v195_v7 = vpop.eup %194 }
  0xb5   :  { %v104_v8 = vmul.f32 %v195_v7, %v99_v6 }
  0xb7   :  { %v106_v10 = vsel %vm105_vm1, %v99_v6, %v104_v8 }
  0xb8   :  { %v109_v12 = vsel %vm107_vm2, %v108_v9, %v106_v10 }
  0xb9   :  { %v117_v13 = vsub.f32 0.5, %v109_v12 }
  0xbb   :  { %v119_v14 = vmax.f32 %v117_v13, 0.0 }
  0xbd   :  { %v125_v16 = vmul.f32 %v119_v14, %v88_v11 }
  0xbf   :  { %v127_v18 = vmul.f32 %v125_v16, %v119_v14 }
  0xc1   :  { %v129_v19 = vadd.f32 %v127_v18, %v123_v17 }
  0xc3   :  { %v145_v20 = vsel %vm144_vm3, %v129_v19, 0.0 }
  0xc4   :  { %148 = vadd.xlane.f32.xlu0 %v145_v20 }
 0x151   :  { %v149_v21 = vpop.xlane.xlu0 %148 }
 0x152   :  { %v150_v22 = vrot.slane %v149_v21, 4 }
 0x154   :  { %v151_v23 = vadd.f32 %v150_v22, %v149_v21 }
 0x156   :  { %v152_v24 = vrot.slane %v151_v23, 2 }
 0x158   :  { %v153_v25 = vadd.f32 %v152_v24, %v151_v23 }
 0x15a   :  { %v154_v26 = vrot.slane %v153_v25, 1 }
 0x15c   :  { %v155_v27 = vadd.f32 %v154_v26, %v153_v25 }
 0x15e   :  { %187 = vpush %v155_v27 }
 0x18f   :  { %s188_s29 = spop %187 }
 0x190   :  { %v157_v28 = vstv %s188_s29 }
 0x191   :  { %159 = vst [vmem:[#allocation5] sm:$0xff] %v157_v28 }
 0x192   :  { %229 = shalt.err (!%p226_p12)
}
 0x193   :  { %s230_s6 = scalar_lea.hbm %s301_s3, 128 }
 0x194   :  { %p231_p13 = scmp.ne.s32.totalorder %s301_s3, %s230_s6  ;;  %p234_p0 = scmp.lt.u32.totalorder %s230_s6, %s301_s3 }
 0x196   :  { %p236_p1 = pnand %p234_p0, %p231_p13 }
 0x198   :  { %239 = shalt.err (!%p236_p1)
}
 0x199   :  { %169 = dma.vmem_to_hbm [thread:$0]  %s167_s2, 128, %s301_s3, [#allocation4]  }
 0x19a   :  { %242 = dma.done.wait [#allocation4], 128  }
 0x19b   :  { %243 = vsyncadd [#allocation4], 4294967168 }
 0x19c   :  { %173 = vsyncpa [#allocation3], 1 }
 0x19d   :  { %174 = vsyncpa [#allocation4], 1 }

</bundles_post_ra>
